<compile_context>
chip_gen: v7x
topology: tpu7x:2x2x1
jax: 0.10.0
libtpu: 0.0.40
codegen_flags: <defaults>
</compile_context>

<pallas_src>
import functools

import jax
import jax.numpy as jnp
from jax.experimental import pallas as pl
from jax.experimental.pallas import tpu as pltpu


def _round_up(n, m):
    return (n + m - 1) // m * m


def _slab_layout(D, H, A):
    """Row offsets of each parameter section in the packed weight slab.
    Every section starts on an 8-row (sublane-tile) boundary so the in-kernel
    static slices never straddle a (8,128) tile row boundary."""
    off = {}
    r = 0

    def take(name, rows):
        nonlocal r
        off[name] = r
        r += _round_up(rows, 8)

    take("w0", D)     # Linear(D->H) weight, stored (in, out), cols [0:H]
    take("b0", 1)     # Linear bias, cols [0:H]
    take("wih", H)    # LSTM W_ih (stored (in, out)), gate order i,f,g,o, cols [0:4H]
    take("whh", H)    # LSTM W_hh (stored (in, out)), cols [0:4H]
    take("bl", 1)     # b_ih + b_hh, cols [0:4H]
    take("wo", H)     # fused output head [Wp | Wv | 0...], cols [0:A+1], rest zero
    take("bo", 1)     # fused output bias [bp | bv | 0...]
    off["rows"] = r
    off["cols"] = max(128, _round_up(4 * H, 128))
    return off


def _ac_net_rollout_kernel(x_ref, slab_ref, out_ref, *, T, B, D, H, A, off):
    # ---- Weight loads: hoisted, once per rollout -------------------------
    w0 = slab_ref[off["w0"]:off["w0"] + D, 0:H]          # (D, H)
    b0 = slab_ref[off["b0"]:off["b0"] + 1, 0:H]          # (1, H)
    wih = slab_ref[off["wih"]:off["wih"] + H, 0:4 * H]   # (H, 4H)
    whh = slab_ref[off["whh"]:off["whh"] + H, 0:4 * H]   # (H, 4H)
    bl = slab_ref[off["bl"]:off["bl"] + 1, 0:4 * H]      # (1, 4H)
    wo = slab_ref[off["wo"]:off["wo"] + H, :]            # (H, 128): [Wp|Wv|0...]
    bo = slab_ref[off["bo"]:off["bo"] + 1, :]            # (1, 128)

    x_all = x_ref[...]                                    # (T*B, D)

    # ---- Non-recurrent matmuls, batched over all T steps -----------------
    # hidden[0]: nn.Linear(D, H) + F.relu, for every step at once.
    h_lin = jnp.maximum(
        jnp.dot(x_all, w0, preferred_element_type=jnp.float32) + b0, 0.0)   # (T*B, H)
    # Input contribution to the LSTM gates (W_ih part + fused bias), all steps.
    g_in = jnp.dot(h_lin, wih, preferred_element_type=jnp.float32) + bl     # (T*B, 4H)

    # ---- Sequential LSTM recurrence (hidden[1]) ---------------------------
    # reinit_hid(): hx / cx start at zero.
    h = jnp.zeros((B, H), jnp.float32)
    c = jnp.zeros((B, H), jnp.float32)
    hs = []
    for t in range(T):  # T is small & static: fully unrolled in the trace
        gates = g_in[t * B:(t + 1) * B, :] + jnp.dot(
            h, whh, preferred_element_type=jnp.float32)                     # (B, 4H)
        # Two full-vreg EUP passes, gate slices taken afterwards.
        sg = jax.nn.sigmoid(gates)
        tg = jnp.tanh(gates)
        i_g = sg[:, 0 * H:1 * H]
        f_g = sg[:, 1 * H:2 * H]
        g_g = tg[:, 2 * H:3 * H]
        o_g = sg[:, 3 * H:4 * H]
        c = f_g * c + i_g * g_g
        h = o_g * jnp.tanh(c)
        hs.append(h)
    h_all = jnp.concatenate(hs, axis=0)                                      # (T*B, H)

    # ---- Fused output heads + softmax, batched over all steps -------------
    # wo cols beyond A+1 are zero in the slab, so heads[:, A+1:] == 0.
    heads = jnp.dot(h_all, wo, preferred_element_type=jnp.float32) + bo      # (T*B, 128)
    logits = heads[:, 0:A]
    value = heads[:, A:A + 1]
    m = jnp.max(logits, axis=1, keepdims=True)
    e = jnp.exp(logits - m)
    s = jnp.sum(e, axis=1, keepdims=True)
    inv = pl.reciprocal(s, approx=True)     # EUP vrcp seed (VALU-free)
    inv = inv * (2.0 - s * inv)             # one Newton step -> f32 accuracy
    policy = e * inv

    # Single lane-dense (128-wide) store: [policy | value | zero padding].
    pad = jnp.zeros((T * B, out_ref.shape[1] - (A + 1)), jnp.float32)
    out_ref[...] = jnp.concatenate([policy, value, pad], axis=1)


def ac_net_rollout(x_seq, slab, *, D, H, A, off):
    """Runs T sequential AC_Net forward steps (an RL rollout after reinit_hid())
    in one gridless Pallas call.  Returns (policy[T,B,A], value[T,B,1])."""
    T, B, _ = x_seq.shape
    OUT = 128  # lane-dense padded output width (A+1 useful columns)
    x2 = x_seq.reshape(T * B, D)
    out = pl.pallas_call(
        functools.partial(_ac_net_rollout_kernel,
                          T=T, B=B, D=D, H=H, A=A, off=off),
        out_shape=jax.ShapeDtypeStruct((T * B, OUT), jnp.float32),
        in_specs=[
            pl.BlockSpec(memory_space=pltpu.MemorySpace.VMEM),  # all observations
            pl.BlockSpec(memory_space=pltpu.MemorySpace.VMEM),  # packed weight slab
        ],
        out_specs=pl.BlockSpec(memory_space=pltpu.MemorySpace.VMEM),
    )(x2, slab)
    out = out.reshape(T, B, OUT)
    return out[:, :, :A], out[:, :, A:A + 1]


def make_params(key, D, H, A):
    ks = jax.random.split(key, 10)
    scale = 0.1
    return {
        # Linear(D -> H), stored (in, out)
        "w0": scale * jax.random.normal(ks[0], (D, H), jnp.float32),
        "b0": scale * jax.random.normal(ks[1], (1, H), jnp.float32),
        # LSTMCell(H -> H): gate stacking order i, f, g, o (PyTorch convention)
        "wih": scale * jax.random.normal(ks[2], (H, 4 * H), jnp.float32),
        "bih": scale * jax.random.normal(ks[3], (1, 4 * H), jnp.float32),
        "whh": scale * jax.random.normal(ks[4], (H, 4 * H), jnp.float32),
        "bhh": scale * jax.random.normal(ks[5], (1, 4 * H), jnp.float32),
        # policy head Linear(H -> A)
        "wp": scale * jax.random.normal(ks[6], (H, A), jnp.float32),
        "bp": scale * jax.random.normal(ks[7], (1, A), jnp.float32),
        # value head Linear(H -> 1)
        "wv": scale * jax.random.normal(ks[8], (H, 1), jnp.float32),
        "bv": scale * jax.random.normal(ks[9], (1, 1), jnp.float32),
    }


def pack_params(p, D, H, A, off):
    """Pack all weights/biases into one contiguous f32 slab (zero-padded), so a
    single HBM->VMEM transfer carries every parameter."""
    slab = jnp.zeros((off["rows"], off["cols"]), jnp.float32)
    slab = slab.at[off["w0"]:off["w0"] + D, 0:H].set(p["w0"])
    slab = slab.at[off["b0"], 0:H].set(p["b0"][0])
    slab = slab.at[off["wih"]:off["wih"] + H, 0:4 * H].set(p["wih"])
    slab = slab.at[off["whh"]:off["whh"] + H, 0:4 * H].set(p["whh"])
    slab = slab.at[off["bl"], 0:4 * H].set((p["bih"] + p["bhh"])[0])
    wo = jnp.concatenate([p["wp"], p["wv"]], axis=1)             # (H, A+1)
    bo = jnp.concatenate([p["bp"], p["bv"]], axis=1)             # (1, A+1)
    slab = slab.at[off["wo"]:off["wo"] + H, 0:A + 1].set(wo)
    slab = slab.at[off["bo"], 0:A + 1].set(bo[0])
    return slab


def ac_net_reference(x_seq, p):
    """Pure-JAX reference: reinit_hid() then T sequential forward() calls."""
    T, B, _ = x_seq.shape
    H = p["wih"].shape[0]
    h = jnp.zeros((B, H), jnp.float32)
    c = jnp.zeros((B, H), jnp.float32)
    policies, values = [], []
    for t in range(T):
        x = x_seq[t]
        hl = jnp.maximum(x @ p["w0"] + p["b0"], 0.0)
        gates = hl @ p["wih"] + p["bih"] + h @ p["whh"] + p["bhh"]
        i_g = jax.nn.sigmoid(gates[:, 0 * H:1 * H])
        f_g = jax.nn.sigmoid(gates[:, 1 * H:2 * H])
        g_g = jnp.tanh(gates[:, 2 * H:3 * H])
        o_g = jax.nn.sigmoid(gates[:, 3 * H:4 * H])
        c = f_g * c + i_g * g_g
        h = o_g * jnp.tanh(c)
        logits = h @ p["wp"] + p["bp"]
        policies.append(jax.nn.softmax(logits, axis=1))
        values.append(h @ p["wv"] + p["bv"])
    return jnp.stack(policies), jnp.stack(values)


if __name__ == "__main__":
    T = 8            # rollout length folded into a single pallas_call
    B = 4            # module default batch_size
    D = 16           # input_dimensions
    H = 32           # hidden_dimensions (both layers)
    A = 4            # action_dimensions

    key = jax.random.PRNGKey(0)
    k_x, k_p = jax.random.split(key)
    x_seq = jax.random.normal(k_x, (T, B, D), jnp.float32)
    params = make_params(k_p, D, H, A)
    off = _slab_layout(D, H, A)
    slab = pack_params(params, D, H, A, off)

    policy, value = ac_net_rollout(x_seq, slab, D=D, H=H, A=A, off=off)
    jax.block_until_ready((policy, value))

    ref_policy, ref_value = ac_net_reference(x_seq, params)
    assert jnp.allclose(policy, ref_policy, atol=1e-4, rtol=1e-4)
    assert jnp.allclose(value, ref_value, atol=1e-4, rtol=1e-4)
    assert jnp.allclose(jnp.sum(policy, axis=-1), 1.0, atol=1e-4)

    print("KERNEL_OK")
</pallas_src>

<mosaic_0001>
module attributes {stable_mosaic.version = 11 : i64} {
  func.func @_ac_net_rollout_kernel(%arg0: memref<32x16xf32, #tpu.memory_space<vmem>>, %arg1: memref<136x128xf32, #tpu.memory_space<vmem>>, %arg2: memref<32x128xf32, #tpu.memory_space<vmem>>) attributes {dimension_semantics = [], scalar_prefetch = 0 : i64, scratch_operands = 0 : i64, tpu.core_type = #tpu.core_type<tc>} {
    %c0 = arith.constant 0 : index
    %c0_0 = arith.constant 0 : index
    %0 = vector.load %arg1[%c0, %c0_0] : memref<136x128xf32, #tpu.memory_space<vmem>>, vector<16x32xf32>
    %c16 = arith.constant 16 : index
    %c0_1 = arith.constant 0 : index
    %1 = vector.load %arg1[%c16, %c0_1] : memref<136x128xf32, #tpu.memory_space<vmem>>, vector<1x32xf32>
    %c24 = arith.constant 24 : index
    %c0_2 = arith.constant 0 : index
    %2 = vector.load %arg1[%c24, %c0_2] : memref<136x128xf32, #tpu.memory_space<vmem>>, vector<32x128xf32>
    %c56 = arith.constant 56 : index
    %c0_3 = arith.constant 0 : index
    %3 = vector.load %arg1[%c56, %c0_3] : memref<136x128xf32, #tpu.memory_space<vmem>>, vector<32x128xf32>
    %c88 = arith.constant 88 : index
    %c0_4 = arith.constant 0 : index
    %4 = vector.load %arg1[%c88, %c0_4] : memref<136x128xf32, #tpu.memory_space<vmem>>, vector<1x128xf32>
    %c96 = arith.constant 96 : index
    %c0_5 = arith.constant 0 : index
    %5 = vector.load %arg1[%c96, %c0_5] : memref<136x128xf32, #tpu.memory_space<vmem>>, vector<32x128xf32>
    %c128 = arith.constant 128 : index
    %c0_6 = arith.constant 0 : index
    %6 = vector.load %arg1[%c128, %c0_6] : memref<136x128xf32, #tpu.memory_space<vmem>>, vector<1x128xf32>
    %c0_7 = arith.constant 0 : index
    %c0_8 = arith.constant 0 : index
    %7 = vector.load %arg0[%c0_7, %c0_8] : memref<32x16xf32, #tpu.memory_space<vmem>>, vector<32x16xf32>
    %cst = arith.constant dense<0.000000e+00> : vector<32x32xf32>
    %8 = tpu.matmul %7, %0, %cst {dimension_numbers = #tpu.dot_dimension_numbers<[1], [0], [0], [1], [0, 0, 1, 1], [], []>} : vector<32x16xf32>, vector<16x32xf32>, vector<32x32xf32> -> vector<32x32xf32>
    %9 = vector.broadcast %1 : vector<1x32xf32> to vector<32x32xf32>
    %10 = arith.addf %8, %9 : vector<32x32xf32>
    %cst_9 = arith.constant 0.000000e+00 : f32
    %11 = vector.broadcast %cst_9 : f32 to vector<32x32xf32>
    %12 = arith.maximumf %10, %11 : vector<32x32xf32>
    %cst_10 = arith.constant dense<0.000000e+00> : vector<32x128xf32>
    %13 = tpu.matmul %12, %2, %cst_10 {dimension_numbers = #tpu.dot_dimension_numbers<[1], [0], [0], [1], [0, 0, 1, 1], [], []>} : vector<32x32xf32>, vector<32x128xf32>, vector<32x128xf32> -> vector<32x128xf32>
    %14 = vector.broadcast %4 : vector<1x128xf32> to vector<32x128xf32>
    %15 = arith.addf %13, %14 : vector<32x128xf32>
    %cst_11 = arith.constant 0.000000e+00 : f32
    %16 = vector.broadcast %cst_11 : f32 to vector<4x32xf32>
    %cst_12 = arith.constant 0.000000e+00 : f32
    %17 = vector.broadcast %cst_12 : f32 to vector<4x32xf32>
    %18 = vector.extract_strided_slice %15 {offsets = [0, 0], sizes = [4, 128], strides = [1, 1]} : vector<32x128xf32> to vector<4x128xf32>
    %cst_13 = arith.constant dense<0.000000e+00> : vector<4x128xf32>
    %19 = tpu.matmul %16, %3, %cst_13 {dimension_numbers = #tpu.dot_dimension_numbers<[1], [0], [0], [1], [0, 0, 1, 1], [], []>} : vector<4x32xf32>, vector<32x128xf32>, vector<4x128xf32> -> vector<4x128xf32>
    %20 = arith.addf %18, %19 : vector<4x128xf32>
    %21 = arith.negf %20 : vector<4x128xf32>
    %22 = math.exp %21 : vector<4x128xf32>
    %cst_14 = arith.constant 1.000000e+00 : f32
    %23 = vector.broadcast %cst_14 : f32 to vector<4x128xf32>
    %24 = arith.addf %23, %22 : vector<4x128xf32>
    %25 = arith.divf %23, %24 : vector<4x128xf32>
    %26 = math.tanh %20 : vector<4x128xf32>
    %27 = vector.extract_strided_slice %25 {offsets = [0, 0], sizes = [4, 32], strides = [1, 1]} : vector<4x128xf32> to vector<4x32xf32>
    %28 = vector.extract_strided_slice %25 {offsets = [0, 32], sizes = [4, 32], strides = [1, 1]} : vector<4x128xf32> to vector<4x32xf32>
    %29 = vector.extract_strided_slice %26 {offsets = [0, 64], sizes = [4, 32], strides = [1, 1]} : vector<4x128xf32> to vector<4x32xf32>
    %30 = vector.extract_strided_slice %25 {offsets = [0, 96], sizes = [4, 32], strides = [1, 1]} : vector<4x128xf32> to vector<4x32xf32>
    %31 = arith.mulf %28, %17 : vector<4x32xf32>
    %32 = arith.mulf %27, %29 : vector<4x32xf32>
    %33 = arith.addf %31, %32 : vector<4x32xf32>
    %34 = math.tanh %33 : vector<4x32xf32>
    %35 = arith.mulf %30, %34 : vector<4x32xf32>
    %36 = vector.extract_strided_slice %15 {offsets = [4, 0], sizes = [4, 128], strides = [1, 1]} : vector<32x128xf32> to vector<4x128xf32>
    %cst_15 = arith.constant dense<0.000000e+00> : vector<4x128xf32>
    %37 = tpu.matmul %35, %3, %cst_15 {dimension_numbers = #tpu.dot_dimension_numbers<[1], [0], [0], [1], [0, 0, 1, 1], [], []>} : vector<4x32xf32>, vector<32x128xf32>, vector<4x128xf32> -> vector<4x128xf32>
    %38 = arith.addf %36, %37 : vector<4x128xf32>
    %39 = arith.negf %38 : vector<4x128xf32>
    %40 = math.exp %39 : vector<4x128xf32>
    %cst_16 = arith.constant 1.000000e+00 : f32
    %41 = vector.broadcast %cst_16 : f32 to vector<4x128xf32>
    %42 = arith.addf %41, %40 : vector<4x128xf32>
    %43 = arith.divf %41, %42 : vector<4x128xf32>
    %44 = math.tanh %38 : vector<4x128xf32>
    %45 = vector.extract_strided_slice %43 {offsets = [0, 0], sizes = [4, 32], strides = [1, 1]} : vector<4x128xf32> to vector<4x32xf32>
    %46 = vector.extract_strided_slice %43 {offsets = [0, 32], sizes = [4, 32], strides = [1, 1]} : vector<4x128xf32> to vector<4x32xf32>
    %47 = vector.extract_strided_slice %44 {offsets = [0, 64], sizes = [4, 32], strides = [1, 1]} : vector<4x128xf32> to vector<4x32xf32>
    %48 = vector.extract_strided_slice %43 {offsets = [0, 96], sizes = [4, 32], strides = [1, 1]} : vector<4x128xf32> to vector<4x32xf32>
    %49 = arith.mulf %46, %33 : vector<4x32xf32>
    %50 = arith.mulf %45, %47 : vector<4x32xf32>
    %51 = arith.addf %49, %50 : vector<4x32xf32>
    %52 = math.tanh %51 : vector<4x32xf32>
    %53 = arith.mulf %48, %52 : vector<4x32xf32>
    %54 = vector.extract_strided_slice %15 {offsets = [8, 0], sizes = [4, 128], strides = [1, 1]} : vector<32x128xf32> to vector<4x128xf32>
    %cst_17 = arith.constant dense<0.000000e+00> : vector<4x128xf32>
    %55 = tpu.matmul %53, %3, %cst_17 {dimension_numbers = #tpu.dot_dimension_numbers<[1], [0], [0], [1], [0, 0, 1, 1], [], []>} : vector<4x32xf32>, vector<32x128xf32>, vector<4x128xf32> -> vector<4x128xf32>
    %56 = arith.addf %54, %55 : vector<4x128xf32>
    %57 = arith.negf %56 : vector<4x128xf32>
    %58 = math.exp %57 : vector<4x128xf32>
    %cst_18 = arith.constant 1.000000e+00 : f32
    %59 = vector.broadcast %cst_18 : f32 to vector<4x128xf32>
    %60 = arith.addf %59, %58 : vector<4x128xf32>
    %61 = arith.divf %59, %60 : vector<4x128xf32>
    %62 = math.tanh %56 : vector<4x128xf32>
    %63 = vector.extract_strided_slice %61 {offsets = [0, 0], sizes = [4, 32], strides = [1, 1]} : vector<4x128xf32> to vector<4x32xf32>
    %64 = vector.extract_strided_slice %61 {offsets = [0, 32], sizes = [4, 32], strides = [1, 1]} : vector<4x128xf32> to vector<4x32xf32>
    %65 = vector.extract_strided_slice %62 {offsets = [0, 64], sizes = [4, 32], strides = [1, 1]} : vector<4x128xf32> to vector<4x32xf32>
    %66 = vector.extract_strided_slice %61 {offsets = [0, 96], sizes = [4, 32], strides = [1, 1]} : vector<4x128xf32> to vector<4x32xf32>
    %67 = arith.mulf %64, %51 : vector<4x32xf32>
    %68 = arith.mulf %63, %65 : vector<4x32xf32>
    %69 = arith.addf %67, %68 : vector<4x32xf32>
    %70 = math.tanh %69 : vector<4x32xf32>
    %71 = arith.mulf %66, %70 : vector<4x32xf32>
    %72 = vector.extract_strided_slice %15 {offsets = [12, 0], sizes = [4, 128], strides = [1, 1]} : vector<32x128xf32> to vector<4x128xf32>
    %cst_19 = arith.constant dense<0.000000e+00> : vector<4x128xf32>
    %73 = tpu.matmul %71, %3, %cst_19 {dimension_numbers = #tpu.dot_dimension_numbers<[1], [0], [0], [1], [0, 0, 1, 1], [], []>} : vector<4x32xf32>, vector<32x128xf32>, vector<4x128xf32> -> vector<4x128xf32>
    %74 = arith.addf %72, %73 : vector<4x128xf32>
    %75 = arith.negf %74 : vector<4x128xf32>
    %76 = math.exp %75 : vector<4x128xf32>
    %cst_20 = arith.constant 1.000000e+00 : f32
    %77 = vector.broadcast %cst_20 : f32 to vector<4x128xf32>
    %78 = arith.addf %77, %76 : vector<4x128xf32>
    %79 = arith.divf %77, %78 : vector<4x128xf32>
    %80 = math.tanh %74 : vector<4x128xf32>
    %81 = vector.extract_strided_slice %79 {offsets = [0, 0], sizes = [4, 32], strides = [1, 1]} : vector<4x128xf32> to vector<4x32xf32>
    %82 = vector.extract_strided_slice %79 {offsets = [0, 32], sizes = [4, 32], strides = [1, 1]} : vector<4x128xf32> to vector<4x32xf32>
    %83 = vector.extract_strided_slice %80 {offsets = [0, 64], sizes = [4, 32], strides = [1, 1]} : vector<4x128xf32> to vector<4x32xf32>
    %84 = vector.extract_strided_slice %79 {offsets = [0, 96], sizes = [4, 32], strides = [1, 1]} : vector<4x128xf32> to vector<4x32xf32>
    %85 = arith.mulf %82, %69 : vector<4x32xf32>
    %86 = arith.mulf %81, %83 : vector<4x32xf32>
    %87 = arith.addf %85, %86 : vector<4x32xf32>
    %88 = math.tanh %87 : vector<4x32xf32>
    %89 = arith.mulf %84, %88 : vector<4x32xf32>
    %90 = vector.extract_strided_slice %15 {offsets = [16, 0], sizes = [4, 128], strides = [1, 1]} : vector<32x128xf32> to vector<4x128xf32>
    %cst_21 = arith.constant dense<0.000000e+00> : vector<4x128xf32>
    %91 = tpu.matmul %89, %3, %cst_21 {dimension_numbers = #tpu.dot_dimension_numbers<[1], [0], [0], [1], [0, 0, 1, 1], [], []>} : vector<4x32xf32>, vector<32x128xf32>, vector<4x128xf32> -> vector<4x128xf32>
    %92 = arith.addf %90, %91 : vector<4x128xf32>
    %93 = arith.negf %92 : vector<4x128xf32>
    %94 = math.exp %93 : vector<4x128xf32>
    %cst_22 = arith.constant 1.000000e+00 : f32
    %95 = vector.broadcast %cst_22 : f32 to vector<4x128xf32>
    %96 = arith.addf %95, %94 : vector<4x128xf32>
    %97 = arith.divf %95, %96 : vector<4x128xf32>
    %98 = math.tanh %92 : vector<4x128xf32>
    %99 = vector.extract_strided_slice %97 {offsets = [0, 0], sizes = [4, 32], strides = [1, 1]} : vector<4x128xf32> to vector<4x32xf32>
    %100 = vector.extract_strided_slice %97 {offsets = [0, 32], sizes = [4, 32], strides = [1, 1]} : vector<4x128xf32> to vector<4x32xf32>
    %101 = vector.extract_strided_slice %98 {offsets = [0, 64], sizes = [4, 32], strides = [1, 1]} : vector<4x128xf32> to vector<4x32xf32>
    %102 = vector.extract_strided_slice %97 {offsets = [0, 96], sizes = [4, 32], strides = [1, 1]} : vector<4x128xf32> to vector<4x32xf32>
    %103 = arith.mulf %100, %87 : vector<4x32xf32>
    %104 = arith.mulf %99, %101 : vector<4x32xf32>
    %105 = arith.addf %103, %104 : vector<4x32xf32>
    %106 = math.tanh %105 : vector<4x32xf32>
    %107 = arith.mulf %102, %106 : vector<4x32xf32>
    %108 = vector.extract_strided_slice %15 {offsets = [20, 0], sizes = [4, 128], strides = [1, 1]} : vector<32x128xf32> to vector<4x128xf32>
    %cst_23 = arith.constant dense<0.000000e+00> : vector<4x128xf32>
    %109 = tpu.matmul %107, %3, %cst_23 {dimension_numbers = #tpu.dot_dimension_numbers<[1], [0], [0], [1], [0, 0, 1, 1], [], []>} : vector<4x32xf32>, vector<32x128xf32>, vector<4x128xf32> -> vector<4x128xf32>
    %110 = arith.addf %108, %109 : vector<4x128xf32>
    %111 = arith.negf %110 : vector<4x128xf32>
    %112 = math.exp %111 : vector<4x128xf32>
    %cst_24 = arith.constant 1.000000e+00 : f32
    %113 = vector.broadcast %cst_24 : f32 to vector<4x128xf32>
    %114 = arith.addf %113, %112 : vector<4x128xf32>
    %115 = arith.divf %113, %114 : vector<4x128xf32>
    %116 = math.tanh %110 : vector<4x128xf32>
    %117 = vector.extract_strided_slice %115 {offsets = [0, 0], sizes = [4, 32], strides = [1, 1]} : vector<4x128xf32> to vector<4x32xf32>
    %118 = vector.extract_strided_slice %115 {offsets = [0, 32], sizes = [4, 32], strides = [1, 1]} : vector<4x128xf32> to vector<4x32xf32>
    %119 = vector.extract_strided_slice %116 {offsets = [0, 64], sizes = [4, 32], strides = [1, 1]} : vector<4x128xf32> to vector<4x32xf32>
    %120 = vector.extract_strided_slice %115 {offsets = [0, 96], sizes = [4, 32], strides = [1, 1]} : vector<4x128xf32> to vector<4x32xf32>
    %121 = arith.mulf %118, %105 : vector<4x32xf32>
    %122 = arith.mulf %117, %119 : vector<4x32xf32>
    %123 = arith.addf %121, %122 : vector<4x32xf32>
    %124 = math.tanh %123 : vector<4x32xf32>
    %125 = arith.mulf %120, %124 : vector<4x32xf32>
    %126 = vector.extract_strided_slice %15 {offsets = [24, 0], sizes = [4, 128], strides = [1, 1]} : vector<32x128xf32> to vector<4x128xf32>
    %cst_25 = arith.constant dense<0.000000e+00> : vector<4x128xf32>
    %127 = tpu.matmul %125, %3, %cst_25 {dimension_numbers = #tpu.dot_dimension_numbers<[1], [0], [0], [1], [0, 0, 1, 1], [], []>} : vector<4x32xf32>, vector<32x128xf32>, vector<4x128xf32> -> vector<4x128xf32>
    %128 = arith.addf %126, %127 : vector<4x128xf32>
    %129 = arith.negf %128 : vector<4x128xf32>
    %130 = math.exp %129 : vector<4x128xf32>
    %cst_26 = arith.constant 1.000000e+00 : f32
    %131 = vector.broadcast %cst_26 : f32 to vector<4x128xf32>
    %132 = arith.addf %131, %130 : vector<4x128xf32>
    %133 = arith.divf %131, %132 : vector<4x128xf32>
    %134 = math.tanh %128 : vector<4x128xf32>
    %135 = vector.extract_strided_slice %133 {offsets = [0, 0], sizes = [4, 32], strides = [1, 1]} : vector<4x128xf32> to vector<4x32xf32>
    %136 = vector.extract_strided_slice %133 {offsets = [0, 32], sizes = [4, 32], strides = [1, 1]} : vector<4x128xf32> to vector<4x32xf32>
    %137 = vector.extract_strided_slice %134 {offsets = [0, 64], sizes = [4, 32], strides = [1, 1]} : vector<4x128xf32> to vector<4x32xf32>
    %138 = vector.extract_strided_slice %133 {offsets = [0, 96], sizes = [4, 32], strides = [1, 1]} : vector<4x128xf32> to vector<4x32xf32>
    %139 = arith.mulf %136, %123 : vector<4x32xf32>
    %140 = arith.mulf %135, %137 : vector<4x32xf32>
    %141 = arith.addf %139, %140 : vector<4x32xf32>
    %142 = math.tanh %141 : vector<4x32xf32>
    %143 = arith.mulf %138, %142 : vector<4x32xf32>
    %144 = vector.extract_strided_slice %15 {offsets = [28, 0], sizes = [4, 128], strides = [1, 1]} : vector<32x128xf32> to vector<4x128xf32>
    %cst_27 = arith.constant dense<0.000000e+00> : vector<4x128xf32>
    %145 = tpu.matmul %143, %3, %cst_27 {dimension_numbers = #tpu.dot_dimension_numbers<[1], [0], [0], [1], [0, 0, 1, 1], [], []>} : vector<4x32xf32>, vector<32x128xf32>, vector<4x128xf32> -> vector<4x128xf32>
    %146 = arith.addf %144, %145 : vector<4x128xf32>
    %147 = arith.negf %146 : vector<4x128xf32>
    %148 = math.exp %147 : vector<4x128xf32>
    %cst_28 = arith.constant 1.000000e+00 : f32
    %149 = vector.broadcast %cst_28 : f32 to vector<4x128xf32>
    %150 = arith.addf %149, %148 : vector<4x128xf32>
    %151 = arith.divf %149, %150 : vector<4x128xf32>
    %152 = math.tanh %146 : vector<4x128xf32>
    %153 = vector.extract_strided_slice %151 {offsets = [0, 0], sizes = [4, 32], strides = [1, 1]} : vector<4x128xf32> to vector<4x32xf32>
    %154 = vector.extract_strided_slice %151 {offsets = [0, 32], sizes = [4, 32], strides = [1, 1]} : vector<4x128xf32> to vector<4x32xf32>
    %155 = vector.extract_strided_slice %152 {offsets = [0, 64], sizes = [4, 32], strides = [1, 1]} : vector<4x128xf32> to vector<4x32xf32>
    %156 = vector.extract_strided_slice %151 {offsets = [0, 96], sizes = [4, 32], strides = [1, 1]} : vector<4x128xf32> to vector<4x32xf32>
    %157 = arith.mulf %154, %141 : vector<4x32xf32>
    %158 = arith.mulf %153, %155 : vector<4x32xf32>
    %159 = arith.addf %157, %158 : vector<4x32xf32>
    %160 = math.tanh %159 : vector<4x32xf32>
    %161 = arith.mulf %156, %160 : vector<4x32xf32>
    %162 = tpu.concatenate %35, %53, %71, %89, %107, %125, %143, %161 in 0 : vector<4x32xf32>, vector<4x32xf32>, vector<4x32xf32>, vector<4x32xf32>, vector<4x32xf32>, vector<4x32xf32>, vector<4x32xf32>, vector<4x32xf32> -> vector<32x32xf32>
    %cst_29 = arith.constant dense<0.000000e+00> : vector<32x128xf32>
    %163 = tpu.matmul %162, %5, %cst_29 {dimension_numbers = #tpu.dot_dimension_numbers<[1], [0], [0], [1], [0, 0, 1, 1], [], []>} : vector<32x32xf32>, vector<32x128xf32>, vector<32x128xf32> -> vector<32x128xf32>
    %164 = vector.broadcast %6 : vector<1x128xf32> to vector<32x128xf32>
    %165 = arith.addf %163, %164 : vector<32x128xf32>
    %166 = vector.extract_strided_slice %165 {offsets = [0, 0], sizes = [32, 4], strides = [1, 1]} : vector<32x128xf32> to vector<32x4xf32>
    %167 = vector.extract_strided_slice %165 {offsets = [0, 4], sizes = [32, 1], strides = [1, 1]} : vector<32x128xf32> to vector<32x1xf32>
    %cst_30 = arith.constant dense<0xFF800000> : vector<32xf32>
    %168 = vector.multi_reduction <maximumf>, %166, %cst_30 [1] : vector<32x4xf32> to vector<32xf32>
    %169 = vector.shape_cast %168 : vector<32xf32> to vector<32x1xf32>
    %170 = vector.broadcast %169 : vector<32x1xf32> to vector<32x4xf32>
    %171 = arith.subf %166, %170 : vector<32x4xf32>
    %172 = math.exp %171 : vector<32x4xf32>
    %cst_31 = arith.constant dense<0.000000e+00> : vector<32xf32>
    %173 = vector.multi_reduction <add>, %172, %cst_31 [1] : vector<32x4xf32> to vector<32xf32>
    %174 = vector.shape_cast %173 : vector<32xf32> to vector<32x1xf32>
    %175 = tpu.reciprocal %174 {approx = true} : vector<32x1xf32> -> vector<32x1xf32>
    %176 = arith.mulf %174, %175 : vector<32x1xf32>
    %cst_32 = arith.constant 2.000000e+00 : f32
    %177 = vector.broadcast %cst_32 : f32 to vector<32x1xf32>
    %178 = arith.subf %177, %176 : vector<32x1xf32>
    %179 = arith.mulf %175, %178 : vector<32x1xf32>
    %180 = vector.broadcast %179 : vector<32x1xf32> to vector<32x4xf32>
    %181 = arith.mulf %172, %180 : vector<32x4xf32>
    %cst_33 = arith.constant 0.000000e+00 : f32
    %182 = vector.broadcast %cst_33 : f32 to vector<32x123xf32>
    %183 = tpu.concatenate %181, %167, %182 in 1 : vector<32x4xf32>, vector<32x1xf32>, vector<32x123xf32> -> vector<32x128xf32>
    %c0_34 = arith.constant 0 : index
    %c0_35 = arith.constant 0 : index
    %184 = vector.load %arg2[%c0_34, %c0_35] : memref<32x128xf32, #tpu.memory_space<vmem>>, vector<32x128xf32>
    tpu.vector_store %arg2[%c0_34, %c0_35], %183 {strides = array<i32>} : memref<32x128xf32, #tpu.memory_space<vmem>>, vector<32x128xf32>,
    return
  }
}

</mosaic_0001>

<bundles_post_ra>
// kernel: tpu_custom_call.1
= control target key start
LH: loop header
LB: loop body
LE: loop exit
PB: predicated region body
PF: predicated region fallthrough
CT: control target
= control target key end

     0   :  { %7 = vsyncpa [#allocation3], 0  ;;  %s1951_s0 = inlined_call_operand.vmem [shape: f32[32,16], index: 0, kind: input, shape index: {}]   ;;  %s1952_s1 = inlined_call_operand.hbm [shape: f32[136,128], index: 1, kind: input, shape index: {}]   ;;  %s1953_s2 = inlined_call_operand.hbm [shape: f32[32,128], index: 2, kind: output, shape index: {}]  }
   0x1   :  { %8 = vsyncpa [#allocation4], 0  ;;  %s1713_s9 = smov [#allocation2]   ;;  %s1665_s13 = scalar_lea.hbm %s1952_s1, 2176 }
   0x2   :  { %s16_s10 = sshll.u32 %s1713_s9, 4  ;;  %p1666_p0 = scmp.ne.s32.totalorder %s1952_s1, %s1665_s13  ;;  %s17_s10 = int_to_ptr.vmem [resolvable:$true] %s16_s10 }
   0x3   :  { %p1669_p1 = scmp.lt.u32.totalorder %s1665_s13, %s1952_s1 }
   0x5   :  { %p1671_p2 = pnand %p1669_p1, %p1666_p0 }
   0x7   :  { %1674 = shalt.err (!%p1671_p2)
}
   0x8   :  { %s1675_s18 = scalar_lea.vmem %s17_s10, 2176  ;;  %p1680_p4 = scmp.lt.s32.totalorder %s17_s10, %s17_s10 }
   0x9   :  { %p1676_p3 = scmp.ne.s32.totalorder %s17_s10, %s1675_s18  ;;  %p1681_p5 = scmp.lt.s32.totalorder %s1675_s18, %s1675_s18 }
   0xb   :  { %p1682_p6 = por %p1681_p5, %p1680_p4 }
   0xd   :  { %p1683_p7 = pnand %p1682_p6, %p1676_p3 }
   0xf   :  { %1686 = shalt.err (!%p1683_p7)
}
  0x10   :  { %s1714_s19 = smov 128   ;;  %s1715_s20 = smov 8  }
  0x11   :  { %22 = dma.hbm_to_vmem [thread:$0]  %s1952_s1, 2176, %s17_s10, [#allocation3], %s1714_s19, %s1714_s19, %s1715_s20  }
  0x12   :  { %1709 = dma.done.wait [#allocation3], 2176  }
  0x13   :  { %1710 = vsyncadd [#allocation3], 4294965120  ;;  %vm51_vm0 = vcmask 130048   ;;  %v26_v0 = vld [vmem:[#allocation2] sm:$0xff]  ;;  %v27_v1 = vld [vmem:[#allocation2 + $0x8] sm:$0xff]  ;;  %v1716_v15 = vmov 0.0|0.0  }
  0x14   :  { %v43_v2 = vld [vmem:[%s1951_s0] sm:$0xff]  ;;  %v1508_v3 = vpack.c.bf16 %v27_v1, %v26_v0  ;;  %v29_v4 = vld [vmem:[#allocation2 + $0x18] sm:$0xff]  ;;  %v44_v7 = vld [vmem:[%s1951_s0 + $0x8] sm:$0xff]  ;;  %1520 = vmatprep.subr.bf16.mxu0 %v1716_v15  ;;  %vm1717_vm1 = vmmov 0   ;;  %v1718_v20 = vmov 0.0   ;;  %vm157_vm2 = vcmask 261120  }
  0x15   :  { %1386 = vmatprep.mubr.msk.f32.mxu1 %vm51_vm0, %v43_v2  ;;  %v30_v5 = vld [vmem:[#allocation2 + $0x20] sm:$0xff]  ;;  %v45_v8 = vld [vmem:[%s1951_s0 + $0x10] sm:$0xff]  ;;  %v46_v9 = vld [vmem:[%s1951_s0 + $0x18] sm:$0xff]  ;;  %1414 = vmatprep.mubr.msk.f32.mxu0 %vm1717_vm1, %v1718_v20  ;;  %s1719_s0 = smov 64   ;;  %s1720_s30 = smov 32   ;;  %vm1089_vm3 = vcmask 1043456  }
  0x16   :  { %v1512_v6 = vpack.c.bf16 %v30_v5, %v29_v4  ;;  %1509 = vmatprep.subr.bf16.mxu1 %v1508_v3  ;;  %v33_v10 = vld [vmem:[#allocation2 + $0x38] sm:$0xff]  ;;  %v34_v11 = vld [vmem:[#allocation2 + $0x40] sm:$0xff]  ;;  %v31_v12 = vld [vmem:[#allocation2 + $0x28] sm:$0xff]  ;;  %vm1203_vm4 = vcmask 31744   ;;  %vm1264_vm5 = vcmask 39936   ;;  %s1721_s3 = smov [#allocation5]  }
  0x17   :  { %1511 = vmatpush3.bf16.msra.mxu1 %v1508_v3  ;;  %v32_v13 = vld [vmem:[#allocation2 + $0x30] sm:$0xff]  ;;  %v1768_v14 = vpack.c.bf16 %v34_v11, %v33_v10  ;;  %v35_v17 = vld [vmem:[#allocation2 + $0x48] sm:$0xff]  ;;  %v1797_v36 = vld [vmem:[#allocation2 + $0x58] ss:$0 sm:$0xff]  ;;  %s1278_s4 = sshll.u32 %s1721_s3, 4  ;;  %s1279_s4 = int_to_ptr.vmem [resolvable:$true] %s1278_s4 }
  0x18   :  { %1513 = vmatprep.subr.bf16.mxu1 %v1512_v6  ;;  %v1516_v16 = vpack.c.bf16 %v32_v13, %v31_v12  ;;  %v36_v18 = vld [vmem:[#allocation2 + $0x50] sm:$0xff]  ;;  %s1687_s5 = scalar_lea.vmem %s1279_s4, 512  ;;  %p1692_p9 = scmp.lt.s32.totalorder %s1279_s4, %s1279_s4 }
  0x19   :  { %1522 = vmatpush3.bf16.msra.mxu0 %v1768_v14  ;;  %v1773_v19 = vpack.c.bf16 %v36_v18, %v35_v17  ;;  %v1290_v21 = vld [vmem:[#allocation2 + $0x10] ss:$0 sm:$0xff]  ;;  %p1688_p8 = scmp.ne.s32.totalorder %s1279_s4, %s1687_s5  ;;  %p1693_p10 = scmp.lt.s32.totalorder %s1687_s5, %s1687_s5 }
  0x1a   :  { %1387 = vmatmul.mubr.msk.f32.vlgmr.msra.gmra.mrb[0].mxu1 %vm51_vm0, %v44_v7  ;;  %1523 = vmatprep.subr.bf16.mxu0 %v1716_v15 }
  0x1b   :  { %1389 = vmatprep.mubr.msk.f32.mxu1 %vm51_vm0, %v45_v8  ;;  %1515 = vmatpush3.bf16.msra.mxu1 %v1512_v6  ;;  %p1694_p11 = por %p1693_p10, %p1692_p9 }
  0x1c   :  { %1517 = vmatprep.subr.bf16.mxu1 %v1516_v16 }
  0x1d   :  { %1525 = vmatpush3.bf16.msra.mxu0 %v1773_v19  ;;  %p1695_p12 = pnand %p1694_p11, %p1688_p8 }
  0x1e   :  { %1390 = vmatmul.mubr.msk.f32.gmra.mrb[2].mxu1 %vm51_vm0, %v46_v9  ;;  %1532 = vmatprep.subr.bf16.mxu0 %v1716_v15 }
  0x1f   :  { %1519 = vmatpush3.bf16.msra.mxu1 %v1516_v16 }
  0x20   :  { %1526 = vmatprep.subr.bf16.mxu1 %v1716_v15  ;;  %1415 = vmatmul.mubr.f32.vlgmr.msra.gmra.mrb[0].mxu0 %v1718_v20 }
  0x21   :  { %1534 = vmatpush3.bf16.msra.mxu0 %v1768_v14  ;;  %1436 = vmatprep.mubr.msk.f32.mxu0 %vm1717_vm1, %v1718_v20 }
  0x22   :  { %1535 = vmatprep.subr.bf16.mxu0 %v1716_v15 }
  0x25   :  { %1537 = vmatpush3.bf16.msra.mxu0 %v1773_v19 }
  0x26   :  { %1544 = vmatprep.subr.bf16.mxu0 %v1716_v15 }
  0xed   :  { %v1388_v22 = vpop.f32.mrb[0].mxu1 }
  0xee   :  { %v136_v23 = vadd.f32 %v1388_v22, %v1290_v21  ;;  %v130_v24 = vpop.f32.mrb[1].mxu1 }
  0xef   :  { %v131_v25 = vadd.f32 %v1290_v21, %v130_v24 }
  0xf0   :  { %v150_v27 = vmax.f32 %v136_v23, 0.0 }
  0xf1   :  { %v149_v26 = vmax.f32 %v131_v25, 0.0  ;;  %v1391_v28 = vpop.f32.mrb[2].mxu1 }
  0xf2   :  { %v146_v29 = vadd.f32 %v1391_v28, %v1290_v21  ;;  %v140_v30 = vpop.f32.mrb[3].mxu1 }
  0xf3   :  { %1400 = vmatprep.mubr.msk.f32.mxu1 %vm157_vm2, %v149_v26  ;;  %v141_v31 = vadd.f32 %v1290_v21, %v140_v30  ;;  %v324_v34 = vpop.f32.mrb[0].mxu0 }
  0xf4   :  { %1401 = vmatmul.mubr.msk.f32.vlgmr.msra.gmra.mrb[4].mxu1 %vm157_vm2, %v150_v27  ;;  %v152_v32 = vmax.f32 %v146_v29, 0.0  ;;  %v1416_v35 = vpop.f32.mrb[1].mxu0 }
  0xf5   :  { %1528 = vmatpush3.bf16.msra.mxu1 %v1768_v14  ;;  %v151_v33 = vmax.f32 %v141_v31, 0.0 }
  0xf6   :  { %1529 = vmatprep.subr.bf16.mxu1 %v1716_v15 }
  0xf7   :  { %1403 = vmatprep.mubr.msk.f32.mxu1 %vm157_vm2, %v151_v33 }
  0xf8   :  { %1404 = vmatmul.mubr.msk.f32.gmra.mrb[6].mxu1 %vm157_vm2, %v152_v32 }
  0xf9   :  { %1531 = vmatpush3.bf16.msra.mxu1 %v1773_v19  ;;  %1425 = vmatprep.mubr.msk.f32.mxu1 %vm1717_vm1, %v1718_v20 }
  0xfa   :  { %1538 = vmatprep.subr.bf16.mxu1 %v1716_v15 }
 0x1c7   :  { %v1799_v37 = vpop.f32.mrb[4].mxu1 }
 0x1c8   :  { %v236_v38 = vpop.f32.mrb[5].mxu1  ;;  %v242_v13 = vadd.f32 %v1799_v37, %v1797_v36 }
 0x1c9   :  { %v237_v39 = vadd.f32 %v1797_v36, %v236_v38 }
 0x1cb   :  { %v328_v40 = vadd.f32 %v324_v34, %v237_v39  ;;  %v1803_v42 = vpop.f32.mrb[6].mxu1 }
 0x1cc   :  { %v1805_v43 = vpop.f32.mrb[7].mxu1 }
 0x1cd   :  { %1585 = vtanh.f32 %v328_v40  ;;  %v1300_v44 = vmul.f32 -1.442695, %v328_v40 }
 0x1cf   :  { %1587 = vpow2.f32 %v1300_v44 }
 0x1d7   :  { %v1586_v41 = vpop.eup %1585 }
 0x1d8   :  { %338 = vrot.lane.b32.xlu0 %v1586_v41, %s1719_s0 }
 0x1d9   :  { %v1588_v45 = vpop.eup %1587 }
 0x1da   :  { %v332_v46 = vadd.f32 1.0, %v1588_v45 }
 0x1dc   :  { %1589 = vrcp.f32 %v332_v46 }
 0x1e6   :  { %v1590_v47 = vpop.eup %1589 }
 0x1e7   :  { %v336_v50 = vmul.f32 0.0, %v1590_v47 }
 0x24a   :  { %v339_v48 = vpop.permute.xlu0 %338 }
 0x24b   :  { %v341_v49 = vmul.f32 %v1590_v47, %v339_v48 }
 0x24d   :  { %343 = vrot.lane.b32.xlu0 %v341_v49, %s1720_s30 }
 0x2bf   :  { %v344_v51 = vpop.permute.xlu0 %343 }
 0x2c0   :  { %v346_v52 = vadd.f32 %v344_v51, %v336_v50 }
 0x2c2   :  { %1591 = vtanh.f32 %v346_v52  ;;  %v440_v4 = vrot.slane %v346_v52, 4 }
 0x2cc   :  { %v1592_v53 = vpop.eup %1591 }
 0x2cd   :  { %349 = vrot.lane.b32.xlu1 %v1592_v53, %s1719_s0 }
 0x33f   :  { %v350_v54 = vpop.permute.xlu1 %349 }
 0x340   :  { %v1809_v55 = vmul.f32 %v1590_v47, %v350_v54 }
 0x342   :  { %354 = vrot.lane.b32.xlu1 %v1809_v55, %s1720_s30 }
 0x3b4   :  { %v355_v56 = vpop.permute.xlu1 %354 }
 0x3b5   :  { %1426 = vmatmul.mubr.msk.f32.vlgmr.msra.gmra.mrb[8].mxu1 %vm157_vm2, %v355_v56 }
 0x3b6   :  { %1540 = vmatpush3.bf16.msra.mxu1 %v1768_v14  ;;  %1447 = vmatprep.mubr.msk.f32.mxu1 %vm1717_vm1, %v1718_v20 }
 0x3b7   :  { %1541 = vmatprep.subr.bf16.mxu1 %v1716_v15 }
 0x3ba   :  { %1543 = vmatpush3.bf16.msra.mxu1 %v1773_v19 }
 0x3bb   :  { %1550 = vmatprep.subr.bf16.mxu1 %v1716_v15 }
 0x488   :  { %v424_v57 = vpop.f32.mrb[8].mxu1 }
 0x489   :  { %v429_v58 = vrot.slane %v424_v57, 4  ;;  %v1427_v59 = vpop.f32.mrb[9].mxu1 }
 0x48b   :  { %v431_v60 = vadd.f32 %v429_v58, %v237_v39 }
 0x48d   :  { %1593 = vtanh.f32 %v431_v60  ;;  %v1302_v62 = vmul.f32 -1.442695, %v431_v60  ;;  %v247_v60 = vadd.f32 %v1797_v36, %v1805_v43 }
 0x48f   :  { %1595 = vpow2.f32 %v1302_v62 }
 0x497   :  { %v1594_v61 = vpop.eup %1593 }
 0x498   :  { %444 = vrot.lane.b32.xlu0 %v1594_v61, %s1719_s0 }
 0x499   :  { %v1596_v63 = vpop.eup %1595 }
 0x49a   :  { %v435_v0 = vadd.f32 1.0, %v1596_v63 }
 0x49c   :  { %1597 = vrcp.f32 %v435_v0 }
 0x4a6   :  { %v1598_v1 = vpop.eup %1597 }
 0x4a7   :  { %v442_v5 = vmul.f32 %v1598_v1, %v440_v4 }
 0x50a   :  { %v445_v2 = vpop.permute.xlu0 %444 }
 0x50b   :  { %v447_v3 = vmul.f32 %v1598_v1, %v445_v2 }
 0x50d   :  { %449 = vrot.lane.b32.xlu1 %v447_v3, %s1720_s30 }
 0x57f   :  { %v450_v6 = vpop.permute.xlu1 %449 }
 0x580   :  { %v452_v7 = vadd.f32 %v450_v6, %v442_v5 }
 0x582   :  { %1599 = vtanh.f32 %v452_v7  ;;  %v544_v28 = vrot.slane %v452_v7, 4 }
 0x58c   :  { %v1600_v8 = vpop.eup %1599 }
 0x58d   :  { %455 = vrot.lane.b32.xlu0 %v1600_v8, %s1719_s0 }
 0x5ff   :  { %v456_v9 = vpop.permute.xlu0 %455 }
 0x600   :  { %v1823_v10 = vmul.f32 %v1598_v1, %v456_v9 }
 0x602   :  { %v460_v11 = vrot.slane %v1823_v10, 4 }
 0x604   :  { %461 = vrot.lane.b32.xlu1 %v460_v11, %s1720_s30 }
 0x676   :  { %v462_v12 = vpop.permute.xlu1 %461 }
 0x677   :  { %1437 = vmatmul.mubr.msk.f32.vlgmr.msra.gmra.mrb[2].mxu0 %vm157_vm2, %v462_v12 }
 0x678   :  { %1546 = vmatpush3.bf16.msra.mxu0 %v1768_v14  ;;  %1458 = vmatprep.mubr.msk.f32.mxu0 %vm1717_vm1, %v1718_v20 }
 0x679   :  { %1547 = vmatprep.subr.bf16.mxu0 %v1716_v15 }
 0x67c   :  { %1549 = vmatpush3.bf16.msra.mxu0 %v1773_v19 }
 0x67d   :  { %1556 = vmatprep.subr.bf16.mxu0 %v1716_v15 }
 0x74a   :  { %v531_v16 = vpop.f32.mrb[2].mxu0 }
 0x74b   :  { %v535_v17 = vadd.f32 %v531_v16, %v242_v13  ;;  %v1438_v18 = vpop.f32.mrb[3].mxu0 }
 0x74d   :  { %1601 = vtanh.f32 %v535_v17  ;;  %v1304_v22 = vmul.f32 -1.442695, %v535_v17 }
 0x74f   :  { %1603 = vpow2.f32 %v1304_v22 }
 0x757   :  { %v1602_v21 = vpop.eup %1601 }
 0x758   :  { %548 = vrot.lane.b32.xlu0 %v1602_v21, %s1719_s0 }
 0x759   :  { %v1604_v23 = vpop.eup %1603 }
 0x75a   :  { %v539_v24 = vadd.f32 1.0, %v1604_v23 }
 0x75c   :  { %1605 = vrcp.f32 %v539_v24 }
 0x766   :  { %v1606_v25 = vpop.eup %1605 }
 0x767   :  { %v546_v29 = vmul.f32 %v1606_v25, %v544_v28 }
 0x7ca   :  { %v549_v26 = vpop.permute.xlu0 %548 }
 0x7cb   :  { %v551_v27 = vmul.f32 %v1606_v25, %v549_v26 }
 0x7cd   :  { %553 = vrot.lane.b32.xlu1 %v551_v27, %s1720_s30 }
 0x83f   :  { %v554_v30 = vpop.permute.xlu1 %553 }
 0x840   :  { %v556_v31 = vadd.f32 %v554_v30, %v546_v29 }
 0x842   :  { %1607 = vtanh.f32 %v556_v31  ;;  %v650_v50 = vrot.slane %v556_v31, 4 }
 0x84c   :  { %v1608_v32 = vpop.eup %1607 }
 0x84d   :  { %559 = vrot.lane.b32.xlu0 %v1608_v32, %s1719_s0 }
 0x8bf   :  { %v560_v33 = vpop.permute.xlu0 %559 }
 0x8c0   :  { %v1839_v34 = vmul.f32 %v1606_v25, %v560_v33 }
 0x8c2   :  { %564 = vrot.lane.b32.xlu1 %v1839_v34, %s1720_s30 }
 0x934   :  { %v565_v35 = vpop.permute.xlu1 %564 }
 0x935   :  { %1448 = vmatmul.mubr.msk.f32.vlgmr.msra.gmra.mrb[10].mxu1 %vm157_vm2, %v565_v35 }
 0x936   :  { %1552 = vmatpush3.bf16.msra.mxu1 %v1768_v14  ;;  %1469 = vmatprep.mubr.msk.f32.mxu1 %vm1717_vm1, %v1718_v20 }
 0x937   :  { %1553 = vmatprep.subr.bf16.mxu1 %v1716_v15 }
 0x93a   :  { %1555 = vmatpush3.bf16.msra.mxu1 %v1773_v19 }
 0x93b   :  { %1562 = vmatprep.subr.bf16.mxu1 %v1716_v15 }
 0xa08   :  { %v634_v37 = vpop.f32.mrb[10].mxu1 }
 0xa09   :  { %v639_v38 = vrot.slane %v634_v37, 4  ;;  %v1449_v39 = vpop.f32.mrb[11].mxu1  ;;  %v252_v37 = vadd.f32 %v1803_v42, %v1797_v36 }
 0xa0b   :  { %v641_v40 = vadd.f32 %v639_v38, %v242_v13 }
 0xa0d   :  { %1609 = vtanh.f32 %v641_v40  ;;  %v1306_v44 = vmul.f32 -1.442695, %v641_v40 }
 0xa0f   :  { %1611 = vpow2.f32 %v1306_v44 }
 0xa17   :  { %v1610_v41 = vpop.eup %1609 }
 0xa18   :  { %654 = vrot.lane.b32.xlu0 %v1610_v41, %s1719_s0 }
 0xa19   :  { %v1612_v45 = vpop.eup %1611 }
 0xa1a   :  { %v645_v46 = vadd.f32 1.0, %v1612_v45 }
 0xa1c   :  { %1613 = vrcp.f32 %v645_v46 }
 0xa26   :  { %v1614_v47 = vpop.eup %1613 }
 0xa27   :  { %v652_v51 = vmul.f32 %v1614_v47, %v650_v50 }
 0xa8a   :  { %v655_v48 = vpop.permute.xlu0 %654 }
 0xa8b   :  { %v657_v49 = vmul.f32 %v1614_v47, %v655_v48 }
 0xa8d   :  { %659 = vrot.lane.b32.xlu1 %v657_v49, %s1720_s30 }
 0xaff   :  { %v660_v52 = vpop.permute.xlu1 %659 }
 0xb00   :  { %v662_v53 = vadd.f32 %v660_v52, %v652_v51 }
 0xb02   :  { %1615 = vtanh.f32 %v662_v53  ;;  %v754_v7 = vrot.slane %v662_v53, 4 }
 0xb0c   :  { %v1616_v54 = vpop.eup %1615 }
 0xb0d   :  { %665 = vrot.lane.b32.xlu0 %v1616_v54, %s1719_s0 }
 0xb7f   :  { %v666_v56 = vpop.permute.xlu0 %665 }
 0xb80   :  { %v1853_v57 = vmul.f32 %v1614_v47, %v666_v56 }
 0xb82   :  { %v670_v58 = vrot.slane %v1853_v57, 4 }
 0xb84   :  { %671 = vrot.lane.b32.xlu1 %v670_v58, %s1720_s30 }
 0xbf6   :  { %v672_v59 = vpop.permute.xlu1 %671 }
 0xbf7   :  { %1459 = vmatmul.mubr.msk.f32.vlgmr.msra.gmra.mrb[4].mxu0 %vm157_vm2, %v672_v59 }
 0xbf8   :  { %1558 = vmatpush3.bf16.msra.mxu0 %v1768_v14  ;;  %1480 = vmatprep.mubr.msk.f32.mxu0 %vm1717_vm1, %v1718_v20 }
 0xbf9   :  { %1559 = vmatprep.subr.bf16.mxu0 %v1716_v15 }
 0xbfc   :  { %1561 = vmatpush3.bf16.msra.mxu0 %v1773_v19 }
 0xcca   :  { %v741_v61 = vpop.f32.mrb[4].mxu0 }
 0xccb   :  { %v745_v62 = vadd.f32 %v741_v61, %v247_v60  ;;  %v1460_v63 = vpop.f32.mrb[5].mxu0 }
 0xccd   :  { %1617 = vtanh.f32 %v745_v62  ;;  %v1308_v1 = vmul.f32 -1.442695, %v745_v62 }
 0xccf   :  { %1619 = vpow2.f32 %v1308_v1 }
 0xcd7   :  { %v1618_v0 = vpop.eup %1617 }
 0xcd8   :  { %758 = vrot.lane.b32.xlu0 %v1618_v0, %s1719_s0 }
 0xcd9   :  { %v1620_v2 = vpop.eup %1619 }
 0xcda   :  { %v749_v3 = vadd.f32 1.0, %v1620_v2 }
 0xcdc   :  { %1621 = vrcp.f32 %v749_v3 }
 0xce6   :  { %v1622_v4 = vpop.eup %1621 }
 0xce7   :  { %v756_v8 = vmul.f32 %v1622_v4, %v754_v7  ;;  %v39_v7 = vld [vmem:[#allocation2 + $0x68] sm:$0xff] }
 0xd4a   :  { %v759_v5 = vpop.permute.xlu0 %758 }
 0xd4b   :  { %v761_v6 = vmul.f32 %v1622_v4, %v759_v5  ;;  %v1090_v5 = vsel %vm1089_vm3, %v1809_v55, %v1823_v10 }
 0xd4d   :  { %763 = vrot.lane.b32.xlu1 %v761_v6, %s1720_s30  ;;  %v38_v6 = vld [vmem:[#allocation2 + $0x60] sm:$0xff] }
 0xdbf   :  { %v764_v43 = vpop.permute.xlu1 %763 }
 0xdc0   :  { %v766_v9 = vadd.f32 %v764_v43, %v756_v8  ;;  %v1568_v8 = vpack.c.bf16 %v39_v7, %v38_v6 }
 0xdc2   :  { %1623 = vtanh.f32 %v766_v9  ;;  %1569 = vmatprep.subr.bf16.mxu0 %v1568_v8 }
 0xdcc   :  { %v1624_v11 = vpop.eup %1623 }
 0xdcd   :  { %769 = vrot.lane.b32.xlu0 %v1624_v11, %s1719_s0  ;;  %v40_v11 = vld [vmem:[#allocation2 + $0x70] sm:$0xff] }
 0xe3f   :  { %v770_v12 = vpop.permute.xlu0 %769 }
 0xe40   :  { %v1868_v13 = vmul.f32 %v1622_v4, %v770_v12  ;;  %v41_v12 = vld [vmem:[#allocation2 + $0x78] sm:$0xff] }
 0xe42   :  { %774 = vrot.lane.b32.xlu1 %v1868_v13, %s1720_s30 }
 0xeb4   :  { %v775_v16 = vpop.permute.xlu1 %774 }
 0xeb5   :  { %1470 = vmatmul.mubr.msk.f32.vlgmr.msra.gmra.mrb[12].mxu1 %vm157_vm2, %v775_v16 }
 0xeb6   :  { %1564 = vmatpush3.bf16.msra.mxu1 %v1768_v14  ;;  %1491 = vmatprep.mubr.msk.f32.mxu1 %vm1717_vm1, %v1718_v20 }
 0xeb7   :  { %1565 = vmatprep.subr.bf16.mxu1 %v1716_v15  ;;  %v860_v15 = vrot.slane %v766_v9, 4 }
 0xeba   :  { %1567 = vmatpush3.bf16.msra.mxu1 %v1773_v19 }
 0xf88   :  { %v844_v17 = vpop.f32.mrb[12].mxu1 }
 0xf89   :  { %v849_v18 = vrot.slane %v844_v17, 4  ;;  %v1471_v21 = vpop.f32.mrb[13].mxu1  ;;  %v1572_v17 = vpack.c.bf16 %v41_v12, %v40_v11 }
 0xf8b   :  { %v851_v22 = vadd.f32 %v849_v18, %v247_v60 }
 0xf8d   :  { %1625 = vtanh.f32 %v851_v22  ;;  %v1310_v24 = vmul.f32 -1.442695, %v851_v22 }
 0xf8f   :  { %1627 = vpow2.f32 %v1310_v24 }
 0xf97   :  { %v1626_v23 = vpop.eup %1625 }
 0xf98   :  { %864 = vrot.lane.b32.xlu0 %v1626_v23, %s1719_s0 }
 0xf99   :  { %v1628_v25 = vpop.eup %1627 }
 0xf9a   :  { %v855_v26 = vadd.f32 1.0, %v1628_v25 }
 0xf9c   :  { %1629 = vrcp.f32 %v855_v26 }
 0xfa6   :  { %v1630_v14 = vpop.eup %1629 }
 0xfa7   :  { %v862_v19 = vmul.f32 %v1630_v14, %v860_v15 }
0x100a   :  { %v865_v27 = vpop.permute.xlu0 %864 }
0x100b   :  { %v867_v20 = vmul.f32 %v1630_v14, %v865_v27  ;;  %v1315_v27 = vld [vmem:[#allocation2 + $0x80] ss:$0 sm:$0xff] }
0x100d   :  { %869 = vrot.lane.b32.xlu1 %v867_v20, %s1720_s30 }
0x107f   :  { %v870_v28 = vpop.permute.xlu1 %869 }
0x1080   :  { %v872_v29 = vadd.f32 %v870_v28, %v862_v19 }
0x1082   :  { %1631 = vtanh.f32 %v872_v29  ;;  %v964_v50 = vrot.slane %v872_v29, 4 }
0x108c   :  { %v1632_v30 = vpop.eup %1631 }
0x108d   :  { %875 = vrot.lane.b32.xlu0 %v1632_v30, %s1719_s0 }
0x10ff   :  { %v876_v31 = vpop.permute.xlu0 %875 }
0x1100   :  { %v878_v32 = vmul.f32 %v1630_v14, %v876_v31 }
0x1102   :  { %v880_v33 = vrot.slane %v878_v32, 4  ;;  %v1092_v43 = vsel %vm1089_vm3, %v1868_v13, %v878_v32  ;;  %v1091_v13 = vsel %vm1089_vm3, %v1839_v34, %v1853_v57 }
0x1104   :  { %881 = vrot.lane.b32.xlu1 %v880_v33, %s1720_s30 }
0x1176   :  { %v882_v35 = vpop.permute.xlu1 %881 }
0x1177   :  { %1481 = vmatmul.mubr.msk.f32.vlgmr.msra.gmra.mrb[6].mxu0 %vm157_vm2, %v882_v35 }
0x1178   :  { %1571 = vmatpush3.bf16.msra.mxu0 %v1568_v8 }
0x1179   :  { %1573 = vmatprep.subr.bf16.mxu0 %v1572_v17 }
0x117c   :  { %1575 = vmatpush3.bf16.msra.mxu0 %v1572_v17 }
0x124a   :  { %v951_v38 = vpop.f32.mrb[6].mxu0 }
0x124b   :  { %v955_v39 = vadd.f32 %v951_v38, %v252_v37  ;;  %v1482_v40 = vpop.f32.mrb[7].mxu0 }
0x124d   :  { %1633 = vtanh.f32 %v955_v39  ;;  %v1312_v44 = vmul.f32 -1.442695, %v955_v39 }
0x124f   :  { %1635 = vpow2.f32 %v1312_v44 }
0x1257   :  { %v1634_v41 = vpop.eup %1633 }
0x1258   :  { %968 = vrot.lane.b32.xlu0 %v1634_v41, %s1719_s0 }
0x1259   :  { %v1636_v45 = vpop.eup %1635 }
0x125a   :  { %v959_v46 = vadd.f32 1.0, %v1636_v45 }
0x125c   :  { %1637 = vrcp.f32 %v959_v46 }
0x1266   :  { %v1638_v47 = vpop.eup %1637 }
0x1267   :  { %v966_v51 = vmul.f32 %v1638_v47, %v964_v50 }
0x12ca   :  { %v969_v48 = vpop.permute.xlu0 %968 }
0x12cb   :  { %v971_v49 = vmul.f32 %v1638_v47, %v969_v48 }
0x12cd   :  { %973 = vrot.lane.b32.xlu1 %v971_v49, %s1720_s30 }
0x133f   :  { %v974_v36 = vpop.permute.xlu1 %973 }
0x1340   :  { %v976_v42 = vadd.f32 %v974_v36, %v966_v51 }
0x1342   :  { %1639 = vtanh.f32 %v976_v42  ;;  %v1070_v9 = vrot.slane %v976_v42, 4 }
0x134c   :  { %v1640_v52 = vpop.eup %1639 }
0x134d   :  { %979 = vrot.lane.b32.xlu0 %v1640_v52, %s1719_s0 }
0x13bf   :  { %v980_v53 = vpop.permute.xlu0 %979 }
0x13c0   :  { %v982_v54 = vmul.f32 %v1638_v47, %v980_v53 }
0x13c2   :  { %984 = vrot.lane.b32.xlu1 %v982_v54, %s1720_s30 }
0x1434   :  { %v985_v56 = vpop.permute.xlu1 %984 }
0x1435   :  { %1492 = vmatmul.mubr.msk.f32.vlgmr.msra.gmra.mrb[14].mxu1 %vm157_vm2, %v985_v56 }
0x1508   :  { %v1054_v58 = vpop.f32.mrb[14].mxu1 }
0x1509   :  { %v1059_v59 = vrot.slane %v1054_v58, 4  ;;  %v1493_v60 = vpop.f32.mrb[15].mxu1 }
0x150b   :  { %v1061_v61 = vadd.f32 %v1059_v59, %v252_v37 }
0x150d   :  { %1641 = vtanh.f32 %v1061_v61  ;;  %v1314_v63 = vmul.f32 -1.442695, %v1061_v61 }
0x150f   :  { %1643 = vpow2.f32 %v1314_v63 }
0x1517   :  { %v1642_v62 = vpop.eup %1641 }
0x1518   :  { %1074 = vrot.lane.b32.xlu0 %v1642_v62, %s1719_s0 }
0x1519   :  { %v1644_v0 = vpop.eup %1643 }
0x151a   :  { %v1065_v1 = vadd.f32 1.0, %v1644_v0 }
0x151c   :  { %1645 = vrcp.f32 %v1065_v1 }
0x1526   :  { %v1646_v2 = vpop.eup %1645 }
0x1527   :  { %v1072_v16 = vmul.f32 %v1646_v2, %v1070_v9 }
0x158a   :  { %v1075_v3 = vpop.permute.xlu0 %1074 }
0x158b   :  { %v1077_v4 = vmul.f32 %v1646_v2, %v1075_v3 }
0x158d   :  { %1079 = vrot.lane.b32.xlu1 %v1077_v4, %s1720_s30 }
0x1591   :  { %1102 = vrot.lane.b32.xlu1 %v1090_v5, %s1720_s30 }
0x1595   :  { %1106 = vrot.lane.b32.xlu1 %v1092_v43, %s1720_s30 }
0x15ff   :  { %v1080_v18 = vpop.permute.xlu1 %1079 }
0x1600   :  { %v1082_v21 = vadd.f32 %v1080_v18, %v1072_v16 }
0x1602   :  { %1647 = vtanh.f32 %v1082_v21 }
0x1603   :  { %v1103_v55 = vpop.permute.xlu1 %1102 }
0x1604   :  { %1502 = vmatprep.mubr.msk.f32.mxu0 %vm157_vm2, %v1103_v55 }
0x1607   :  { %v1107_v26 = vpop.permute.xlu1 %1106 }
0x160c   :  { %v1648_v10 = vpop.eup %1647 }
0x160d   :  { %1085 = vrot.lane.b32.xlu0 %v1648_v10, %s1719_s0 }
0x1611   :  { %1104 = vrot.lane.b32.xlu0 %v1091_v13, %s1720_s30 }
0x167f   :  { %v1086_v22 = vpop.permute.xlu0 %1085 }
0x1680   :  { %v1088_v23 = vmul.f32 %v1646_v2, %v1086_v22 }
0x1682   :  { %v1093_v24 = vsel %vm1089_vm3, %v982_v54, %v1088_v23 }
0x1683   :  { %1108 = vrot.lane.b32.xlu0 %v1093_v24, %s1720_s30  ;;  %v1105_v25 = vpop.permute.xlu0 %1104 }
0x1684   :  { %1503 = vmatmul.mubr.msk.f32.vlgmr.msra.gmra.mrb[8].mxu0 %vm157_vm2, %v1105_v25 }
0x1685   :  { %1505 = vmatprep.mubr.msk.f32.mxu0 %vm157_vm2, %v1107_v26 }
0x16f5   :  { %v1109_v14 = vpop.permute.xlu0 %1108 }
0x16f6   :  { %1506 = vmatmul.mubr.msk.f32.gmra.mrb[10].mxu0 %vm157_vm2, %v1109_v14 }
0x1757   :  { %v1504_v20 = vpop.f32.mrb[8].mxu0 }
0x1758   :  { %v1190_v34 = vadd.f32 %v1504_v20, %v1315_v27  ;;  %v1184_v57 = vpop.f32.mrb[9].mxu0 }
0x1759   :  { %v1185_v15 = vadd.f32 %v1315_v27, %v1184_v57 }
0x175a   :  { %v1207_v19 = vsel %vm1203_vm4, %v1190_v34, -inf }
0x175b   :  { %1208 = vmax.xlane.f32.xlu0 %v1207_v19  ;;  %v1204_v28 = vsel %vm1203_vm4, %v1185_v15, -inf }
0x175c   :  { %1205 = vmax.xlane.f32.xlu1 %v1204_v28 }
0x17c9   :  { %v1507_v29 = vpop.f32.mrb[10].mxu0 }
0x17ca   :  { %v1912_v30 = vadd.f32 %v1507_v29, %v1315_v27  ;;  %v1194_v31 = vpop.f32.mrb[11].mxu0 }
0x17cb   :  { %v1914_v32 = vadd.f32 %v1315_v27, %v1194_v31 }
0x17cc   :  { %v1213_v33 = vsel %vm1203_vm4, %v1912_v30, -inf }
0x17cd   :  { %1214 = vmax.xlane.f32.xlu1 %v1213_v33  ;;  %v1210_v35 = vsel %vm1203_vm4, %v1914_v32, -inf }
0x17ce   :  { %1211 = vmax.xlane.f32.xlu0 %v1210_v35 }
0x17e8   :  { %v1209_v37 = vpop.xlane.xlu0 %1208 }
0x17e9   :  { %v1217_v38 = vsub.f32 %v1190_v34, %v1209_v37  ;;  %v1206_v39 = vpop.xlane.xlu1 %1205 }
0x17ea   :  { %v1216_v40 = vsub.f32 %v1185_v15, %v1206_v39 }
0x17eb   :  { %v1222_v41 = vmul.f32 1.442695, %v1217_v38 }
0x17ec   :  { %v1220_v44 = vmul.f32 1.442695, %v1216_v40 }
0x17ed   :  { %1649 = vpow2.f32 %v1222_v41 }
0x17ee   :  { %1651 = vpow2.f32 %v1220_v44 }
0x17f7   :  { %v1650_v45 = vpop.eup %1649 }
0x17f8   :  { %v1652_v46 = vpop.eup %1651  ;;  %v1231_v47 = vsel %vm1203_vm4, %v1650_v45, 0.0 }
0x17f9   :  { %1232 = vadd.xlane.f32.xlu1 %v1231_v47  ;;  %v1228_v48 = vsel %vm1203_vm4, %v1652_v46, 0.0 }
0x17fa   :  { %1229 = vadd.xlane.f32.xlu0 %v1228_v48 }
0x185a   :  { %v1215_v49 = vpop.xlane.xlu1 %1214 }
0x185b   :  { %v1219_v50 = vsub.f32 %v1912_v30, %v1215_v49  ;;  %v1212_v51 = vpop.xlane.xlu0 %1211 }
0x185c   :  { %v1218_v36 = vsub.f32 %v1914_v32, %v1212_v51 }
0x185d   :  { %v1226_v42 = vmul.f32 1.442695, %v1219_v50 }
0x185e   :  { %v1224_v52 = vmul.f32 1.442695, %v1218_v36 }
0x185f   :  { %1653 = vpow2.f32 %v1226_v42 }
0x1860   :  { %1655 = vpow2.f32 %v1224_v52 }
0x1869   :  { %v1654_v53 = vpop.eup %1653 }
0x186a   :  { %v1656_v54 = vpop.eup %1655  ;;  %v1237_v56 = vsel %vm1203_vm4, %v1654_v53, 0.0 }
0x186b   :  { %1238 = vadd.xlane.f32.xlu1 %v1237_v56  ;;  %v1234_v58 = vsel %vm1203_vm4, %v1656_v54, 0.0 }
0x186c   :  { %1235 = vadd.xlane.f32.xlu0 %v1234_v58 }
0x1886   :  { %v1233_v59 = vpop.xlane.xlu1 %1232 }
0x1887   :  { %1657 = vrcp.f32 %v1233_v59  ;;  %v1230_v60 = vpop.xlane.xlu0 %1229 }
0x1888   :  { %1659 = vrcp.f32 %v1230_v60 }
0x1891   :  { %v1658_v61 = vpop.eup %1657 }
0x1892   :  { %v1660_v62 = vpop.eup %1659  ;;  %v1245_v63 = vmul.f32 %v1658_v61, %v1233_v59 }
0x1893   :  { %v1244_v0 = vmul.f32 %v1660_v62, %v1230_v60 }
0x1894   :  { %v1249_v1 = vsub.f32 2.0, %v1245_v63 }
0x1895   :  { %v1248_v2 = vsub.f32 2.0, %v1244_v0 }
0x1896   :  { %v1253_v3 = vmul.f32 %v1658_v61, %v1249_v1 }
0x1897   :  { %v1252_v4 = vmul.f32 %v1660_v62, %v1248_v2 }
0x1898   :  { %v1257_v5 = vmul.f32 %v1650_v45, %v1253_v3 }
0x1899   :  { %v1256_v6 = vmul.f32 %v1652_v46, %v1252_v4 }
0x189a   :  { %v1261_v7 = vsel %vm1203_vm4, %v1257_v5, %v1190_v34 }
0x189b   :  { %v1260_v8 = vsel %vm1203_vm4, %v1256_v6, %v1185_v15  ;;  %v1266_v43 = vsel %vm1264_vm5, %v1261_v7, 0.0 }
0x189c   :  { %v1265_v9 = vsel %vm1264_vm5, %v1260_v8, 0.0  ;;  %1270 = vst [vmem:[#allocation5 + $0x8] sm:$0xff] %v1266_v43 }
0x189d   :  { %1269 = vst [vmem:[#allocation5] sm:$0xff] %v1265_v9 }
0x18f8   :  { %v1239_v11 = vpop.xlane.xlu1 %1238 }
0x18f9   :  { %1661 = vrcp.f32 %v1239_v11  ;;  %v1236_v12 = vpop.xlane.xlu0 %1235 }
0x18fa   :  { %1663 = vrcp.f32 %v1236_v12 }
0x1903   :  { %v1662_v16 = vpop.eup %1661 }
0x1904   :  { %v1664_v17 = vpop.eup %1663  ;;  %v1247_v18 = vmul.f32 %v1662_v16, %v1239_v11 }
0x1905   :  { %v1246_v21 = vmul.f32 %v1664_v17, %v1236_v12 }
0x1906   :  { %v1251_v55 = vsub.f32 2.0, %v1247_v18 }
0x1907   :  { %v1250_v10 = vsub.f32 2.0, %v1246_v21 }
0x1908   :  { %v1255_v13 = vmul.f32 %v1662_v16, %v1251_v55 }
0x1909   :  { %v1254_v22 = vmul.f32 %v1664_v17, %v1250_v10 }
0x190a   :  { %v1259_v23 = vmul.f32 %v1654_v53, %v1255_v13 }
0x190b   :  { %v1258_v24 = vmul.f32 %v1656_v54, %v1254_v22 }
0x190c   :  { %v1263_v25 = vsel %vm1203_vm4, %v1259_v23, %v1912_v30 }
0x190d   :  { %v1262_v26 = vsel %vm1203_vm4, %v1258_v24, %v1914_v32  ;;  %v1268_v14 = vsel %vm1264_vm5, %v1263_v25, 0.0 }
0x190e   :  { %v1267_v27 = vsel %vm1264_vm5, %v1262_v26, 0.0  ;;  %1272 = vst [vmem:[#allocation5 + $0x18] sm:$0xff] %v1268_v14 }
0x190f   :  { %1271 = vst [vmem:[#allocation5 + $0x10] sm:$0xff] %v1267_v27 }
0x1910   :  { %1698 = shalt.err (!%p1695_p12)
}
0x1911   :  { %s1699_s8 = scalar_lea.hbm %s1953_s2, 512 }
0x1912   :  { %p1700_p13 = scmp.ne.s32.totalorder %s1953_s2, %s1699_s8  ;;  %p1703_p0 = scmp.lt.u32.totalorder %s1699_s8, %s1953_s2 }
0x1914   :  { %p1705_p1 = pnand %p1703_p0, %p1700_p13 }
0x1916   :  { %1708 = shalt.err (!%p1705_p1)
}
0x1917   :  { %1284 = dma.vmem_to_hbm [thread:$0]  %s1279_s4, 512, %s1953_s2, [#allocation4], %s1714_s19, %s1714_s19, %s1715_s20  }
0x1918   :  { %1711 = dma.done.wait [#allocation4], 512  }
0x1919   :  { %1712 = vsyncadd [#allocation4], 4294966784 }
0x191a   :  { %1288 = vsyncpa [#allocation3], 1 }
0x191b   :  { %1289 = vsyncpa [#allocation4], 1 }

</bundles_post_ra>
